<compile_context>
chip_gen: v6e
topology: v6e:2x2x1
jax: 0.10.0
libtpu: 0.0.40
codegen_flags: <defaults>
</compile_context>

<pallas_src>
import functools

import jax
import jax.numpy as jnp
from jax.experimental import pallas as pl
from jax.experimental.pallas import tpu as pltpu

LANE = 128       # TPU lane width (last dim)
SUBLANE = 8      # TPU sublane count (second-to-last dim)
MAX_TILE_M = 512 # max batch-tile rows per grid step


def _cdiv(a, b):
    return (a + b - 1) // b


def _round_up(n, m):
    return _cdiv(n, m) * m


def _pad2d(a, rows, cols):
    return jnp.pad(a, ((0, rows - a.shape[0]), (0, cols - a.shape[1])))


@functools.lru_cache(maxsize=1)
def _vmem_limit_bytes():
    """Per-chip VMEM budget: ~3/4 of physical, capped at 96 MiB, >= 48 MiB fallback."""
    default = 48 * 1024 * 1024
    try:
        cap = int(pltpu.get_tpu_info().vmem_capacity_bytes)
    except Exception:
        return default
    return max(default, min(cap * 3 // 4, 96 * 1024 * 1024))


def _const_spec(shape):
    """BlockSpec for grid-invariant (weight/bias) blocks: constant index_map keeps them
    VMEM-resident; single-buffering avoids wasting VMEM on a second buffer that would
    never be used."""
    try:
        return pl.BlockSpec(shape, lambda i: (0, 0), pipeline_mode=pl.Buffered(1))
    except Exception:
        return pl.BlockSpec(shape, lambda i: (0, 0))


# ---------------------------------------------------------------------------
# Fused DEC_AE forward kernel for one batch tile.
# refs = (x, enc_w[0..lvl), enc_b[0..lvl), dec_w[0..lvl), dec_b[0..lvl),
#         x_bar_out, z_out)
# Weights are (K_pad, N_pad) bf16 (pre-transposed, lane-padded), biases (1, N_pad) f32.
# Zero-padded lanes/rows stay exactly zero through the whole chain.
# ---------------------------------------------------------------------------
def _dec_ae_fused_kernel(*refs, lvl):
    x_ref = refs[0]
    enc_w = refs[1:1 + lvl]
    enc_b = refs[1 + lvl:1 + 2 * lvl]
    dec_w = refs[1 + 2 * lvl:1 + 3 * lvl]
    dec_b = refs[1 + 3 * lvl:1 + 4 * lvl]
    x_bar_ref = refs[1 + 4 * lvl]
    z_ref = refs[2 + 4 * lvl]

    # --- encoder chain (unrolled; ReLU fused on all but the last layer) ---
    h = x_ref[...]                                   # f32 activations
    for i in range(lvl):
        # bf16 MXU operands, f32 accumulation; bias add / ReLU in f32.
        h = jnp.dot(h.astype(jnp.bfloat16), enc_w[i][...],
                    preferred_element_type=jnp.float32)
        h = h + enc_b[i][...]
        if i != lvl - 1:
            h = jnp.maximum(h, 0.0)
        # dropout (p=0.2) is identity in eval mode.
    z_ref[...] = h.astype(z_ref.dtype)

    # --- decoder chain (unrolled; ReLU fused on all but the final layer) ---
    xb = h
    for i in range(lvl - 1, -1, -1):
        xb = jnp.dot(xb.astype(jnp.bfloat16), dec_w[i][...],
                     preferred_element_type=jnp.float32)
        xb = xb + dec_b[i][...]
        if i != 0:
            xb = jnp.maximum(xb, 0.0)
        # dropout (p=0.2) is identity in eval mode.
    x_bar_ref[...] = xb.astype(x_bar_ref.dtype)


# ---------------------------------------------------------------------------
# DEC_AE parameters (deterministic init, matching nn.Linear init_weights:
# weight ~ N(0, 0.01), bias = 0). PyTorch layout: enc_w (d_out, d_in).
# ---------------------------------------------------------------------------
def init_dec_ae_params(key, n_input, encoder_dims, n_z):
    dims = [n_input] + list(encoder_dims) + [n_z]
    params = []
    for i in range(len(dims) - 1):
        d_in, d_out = dims[i], dims[i + 1]
        key, k_enc, k_dec = jax.random.split(key, 3)
        enc_w = 0.01 * jax.random.normal(k_enc, (d_out, d_in), dtype=jnp.float32)
        enc_b = jnp.zeros((d_out,), dtype=jnp.float32)
        dec_w = 0.01 * jax.random.normal(k_dec, (d_in, d_out), dtype=jnp.float32)
        dec_b = jnp.zeros((d_in,), dtype=jnp.float32)
        params.append({"enc_w": enc_w, "enc_b": enc_b,
                       "dec_w": dec_w, "dec_b": dec_b})
    return params


# ---------------------------------------------------------------------------
# One-time weight prep (hoisted out of the forward): transpose to (K, N),
# zero-pad every feature dim to a multiple of 128 lanes, cast weights to bf16.
# Biases stay f32 (added post-matmul in f32). Returns (prep_layers, dims).
# ---------------------------------------------------------------------------
def prepare_dec_ae_params(params):
    dims = tuple(int(d) for d in
                 [params[0]["enc_w"].shape[1]] + [p["enc_w"].shape[0] for p in params])
    pdims = [_round_up(d, LANE) for d in dims]
    prep = []
    for i, p in enumerate(params):
        prep.append({
            "enc_w": _pad2d(p["enc_w"].T, pdims[i], pdims[i + 1]).astype(jnp.bfloat16),
            "enc_b": _pad2d(p["enc_b"].reshape(1, -1), 1, pdims[i + 1]).astype(jnp.float32),
            "dec_w": _pad2d(p["dec_w"].T, pdims[i + 1], pdims[i]).astype(jnp.bfloat16),
            "dec_b": _pad2d(p["dec_b"].reshape(1, -1), 1, pdims[i]).astype(jnp.float32),
        })
    return prep, dims


# ---------------------------------------------------------------------------
# DEC_AE forward (eval mode): single fused pallas_call for the whole stack.
# `prep` comes from prepare_dec_ae_params; `dims` are the TRUE (unpadded) feature
# dims (static). Returns (x_bar, z) with padding stripped.
# ---------------------------------------------------------------------------
@functools.partial(jax.jit, static_argnames=("dims", "level"))
def dec_ae_forward_prepared(prep, x, dims, level=None):
    n_layers = len(prep)
    lvl = n_layers if level is None else level + 1

    M, d_in = x.shape
    assert d_in == dims[0]
    pdims = [_round_up(d, LANE) for d in dims]

    # Batch tiling: minimal zero-row padding; >= 2 grid steps when the batch allows it
    # (so v7x's two TensorCores both get work on the "parallel" axis).
    m8 = _round_up(M, SUBLANE)
    n_steps = _cdiv(m8, MAX_TILE_M)
    if n_steps == 1 and m8 >= 2 * SUBLANE:
        n_steps = 2
    tile_m = _round_up(_cdiv(m8, n_steps), SUBLANE)
    m_pad = tile_m * n_steps

    x_p = jnp.pad(x, ((0, m_pad - M), (0, pdims[0] - dims[0])))
    grid = (n_steps,)

    # Activations/outputs march over the batch grid; weights/biases are grid-invariant.
    in_specs = [pl.BlockSpec((tile_m, pdims[0]), lambda i: (i, 0))]
    for i in range(lvl):
        in_specs.append(_const_spec((pdims[i], pdims[i + 1])))     # enc_w (bf16)
    for i in range(lvl):
        in_specs.append(_const_spec((1, pdims[i + 1])))            # enc_b (f32)
    for i in range(lvl):
        in_specs.append(_const_spec((pdims[i + 1], pdims[i])))     # dec_w (bf16)
    for i in range(lvl):
        in_specs.append(_const_spec((1, pdims[i])))                # dec_b (f32)

    out_specs = [
        pl.BlockSpec((tile_m, pdims[0]), lambda i: (i, 0)),    # x_bar (lane-dense, padded)
        pl.BlockSpec((tile_m, pdims[lvl]), lambda i: (i, 0)),  # z     (lane-dense, padded)
    ]
    out_shape = [
        jax.ShapeDtypeStruct((m_pad, pdims[0]), jnp.float32),
        jax.ShapeDtypeStruct((m_pad, pdims[lvl]), jnp.float32),
    ]

    # Advisory cost estimate for the XLA scheduler.
    flops = 0
    bytes_accessed = 4 * (m_pad * pdims[0] + m_pad * pdims[0] + m_pad * pdims[lvl])
    for i in range(lvl):
        flops += 2 * 2 * m_pad * pdims[i] * pdims[i + 1]           # enc + dec matmuls
        bytes_accessed += 2 * 2 * pdims[i] * pdims[i + 1]          # bf16 weights
        bytes_accessed += 4 * (pdims[i] + pdims[i + 1])            # f32 biases

    kernel = functools.partial(_dec_ae_fused_kernel, lvl=lvl)
    enc_ws = [prep[i]["enc_w"] for i in range(lvl)]
    enc_bs = [prep[i]["enc_b"] for i in range(lvl)]
    dec_ws = [prep[i]["dec_w"] for i in range(lvl)]
    dec_bs = [prep[i]["dec_b"] for i in range(lvl)]

    x_bar_p, z_p = pl.pallas_call(
        kernel,
        out_shape=out_shape,
        grid=grid,
        in_specs=in_specs,
        out_specs=out_specs,
        compiler_params=pltpu.CompilerParams(
            dimension_semantics=("parallel",),       # megacore / v7x 2-TC sharding
            vmem_limit_bytes=_vmem_limit_bytes(),
        ),
        cost_estimate=pl.CostEstimate(
            flops=int(flops), transcendentals=0,
            bytes_accessed=int(bytes_accessed)),
    )(x_p, *enc_ws, *enc_bs, *dec_ws, *dec_bs)

    # Strip batch/lane padding.
    return x_bar_p[:M, :dims[0]], z_p[:M, :dims[lvl]]


def dec_ae_forward(params, x, level=None):
    """Convenience wrapper: prepares weights (transpose/pad/bf16) then runs the fused
    kernel. For repeated inference, call prepare_dec_ae_params once and reuse it with
    dec_ae_forward_prepared."""
    prep, dims = prepare_dec_ae_params(params)
    return dec_ae_forward_prepared(prep, x, dims, level=level)


# ---------------------------------------------------------------------------
# Pure-JAX reference (mirrors the PyTorch control flow exactly, f32 throughout).
# ---------------------------------------------------------------------------
def dec_ae_forward_ref(params, x, level=None):
    n_layers = len(params)
    lvl = n_layers if level is None else level + 1
    z = x
    for i in range(lvl):
        z = z @ params[i]["enc_w"].T + params[i]["enc_b"]
        if i != lvl - 1:
            z = jnp.maximum(z, 0.0)
    x_bar = z
    for i in range(lvl - 1, -1, -1):
        x_bar = x_bar @ params[i]["dec_w"].T + params[i]["dec_b"]
        if i != 0:
            x_bar = jnp.maximum(x_bar, 0.0)
    return x_bar, z


if __name__ == "__main__":
    # Small shapes consistent with DEC_AE(n_input, encoder_dims, n_z)
    batch = 8
    n_input = 32
    encoder_dims = [64, 32]
    n_z = 16

    key = jax.random.PRNGKey(0)
    key, k_x = jax.random.split(key)
    x = jax.random.normal(k_x, (batch, n_input), dtype=jnp.float32)
    params = init_dec_ae_params(key, n_input, encoder_dims, n_z)

    # One-time weight prep (hoisted out of the forward pass).
    prep, dims = prepare_dec_ae_params(params)

    # bf16 MXU operands with f32 accumulation -> relaxed tolerances vs f32 reference.
    tol = dict(atol=2e-3, rtol=2e-2)

    # Full depth (level=None): encode down to n_z and decode back.
    x_bar, z = dec_ae_forward_prepared(prep, x, dims, level=None)
    x_bar = jax.block_until_ready(x_bar)
    z = jax.block_until_ready(z)
    x_bar_ref, z_ref = dec_ae_forward_ref(params, x, level=None)
    assert x_bar.shape == (batch, n_input)
    assert z.shape == (batch, n_z)
    assert jnp.allclose(x_bar, x_bar_ref, **tol)
    assert jnp.allclose(z, z_ref, **tol)

    # Partial depth: level=1 -> autoencoders 0 and 1 applied; z has encoder_dims[1] feats.
    x_bar1, z1 = dec_ae_forward_prepared(prep, x, dims, level=1)
    x_bar1 = jax.block_until_ready(x_bar1)
    z1 = jax.block_until_ready(z1)
    x_bar1_ref, z1_ref = dec_ae_forward_ref(params, x, level=1)
    assert x_bar1.shape == (batch, n_input)
    assert z1.shape == (batch, encoder_dims[1])
    assert jnp.allclose(x_bar1, x_bar1_ref, **tol)
    assert jnp.allclose(z1, z1_ref, **tol)

    # Partial depth: level=0 -> single autoencoder.
    x_bar0, z0 = dec_ae_forward_prepared(prep, x, dims, level=0)
    x_bar0 = jax.block_until_ready(x_bar0)
    z0 = jax.block_until_ready(z0)
    x_bar0_ref, z0_ref = dec_ae_forward_ref(params, x, level=0)
    assert x_bar0.shape == (batch, n_input)
    assert z0.shape == (batch, encoder_dims[0])
    assert jnp.allclose(x_bar0, x_bar0_ref, **tol)
    assert jnp.allclose(z0, z0_ref, **tol)

    # Convenience wrapper path (prepare + forward in one call) still works.
    x_bar_c, z_c = dec_ae_forward(params, x, level=None)
    jax.block_until_ready(x_bar_c)
    assert jnp.allclose(x_bar_c, x_bar_ref, **tol)

    print("KERNEL_OK")
</pallas_src>

<mosaic_0001>
module attributes {stable_mosaic.version = 11 : i64} {
  func.func @_dec_ae_fused_kernel(%arg0: i32, %arg1: memref<8x128xf32, #tpu.memory_space<vmem>>, %arg2: memref<128x128xbf16, #tpu.memory_space<vmem>>, %arg3: memref<128x128xbf16, #tpu.memory_space<vmem>>, %arg4: memref<128x128xbf16, #tpu.memory_space<vmem>>, %arg5: memref<1x128xf32, #tpu.memory_space<vmem>>, %arg6: memref<1x128xf32, #tpu.memory_space<vmem>>, %arg7: memref<1x128xf32, #tpu.memory_space<vmem>>, %arg8: memref<128x128xbf16, #tpu.memory_space<vmem>>, %arg9: memref<128x128xbf16, #tpu.memory_space<vmem>>, %arg10: memref<128x128xbf16, #tpu.memory_space<vmem>>, %arg11: memref<1x128xf32, #tpu.memory_space<vmem>>, %arg12: memref<1x128xf32, #tpu.memory_space<vmem>>, %arg13: memref<1x128xf32, #tpu.memory_space<vmem>>, %arg14: memref<8x128xf32, #tpu.memory_space<vmem>>, %arg15: memref<8x128xf32, #tpu.memory_space<vmem>>) attributes {dimension_semantics = [#tpu.dimension_semantics<parallel>], iteration_bounds = array<i64: 1>, scalar_prefetch = 0 : i64, scratch_operands = 0 : i64, tpu.core_type = #tpu.core_type<tc>, window_params = [{transform_indices = @transform_0, window_bounds = array<i64: 8, 128>}, {pipeline_mode = #tpu.pipeline_mode<synchronous>, transform_indices = @transform_1, window_bounds = array<i64: 128, 128>}, {pipeline_mode = #tpu.pipeline_mode<synchronous>, transform_indices = @transform_2, window_bounds = array<i64: 128, 128>}, {pipeline_mode = #tpu.pipeline_mode<synchronous>, transform_indices = @transform_3, window_bounds = array<i64: 128, 128>}, {pipeline_mode = #tpu.pipeline_mode<synchronous>, transform_indices = @transform_4, window_bounds = array<i64: 1, 128>}, {pipeline_mode = #tpu.pipeline_mode<synchronous>, transform_indices = @transform_5, window_bounds = array<i64: 1, 128>}, {pipeline_mode = #tpu.pipeline_mode<synchronous>, transform_indices = @transform_6, window_bounds = array<i64: 1, 128>}, {pipeline_mode = #tpu.pipeline_mode<synchronous>, transform_indices = @transform_7, window_bounds = array<i64: 128, 128>}, {pipeline_mode = #tpu.pipeline_mode<synchronous>, transform_indices = @transform_8, window_bounds = array<i64: 128, 128>}, {pipeline_mode = #tpu.pipeline_mode<synchronous>, transform_indices = @transform_9, window_bounds = array<i64: 128, 128>}, {pipeline_mode = #tpu.pipeline_mode<synchronous>, transform_indices = @transform_10, window_bounds = array<i64: 1, 128>}, {pipeline_mode = #tpu.pipeline_mode<synchronous>, transform_indices = @transform_11, window_bounds = array<i64: 1, 128>}, {pipeline_mode = #tpu.pipeline_mode<synchronous>, transform_indices = @transform_12, window_bounds = array<i64: 1, 128>}, {transform_indices = @transform_13, window_bounds = array<i64: 8, 128>}, {transform_indices = @transform_14, window_bounds = array<i64: 8, 128>}]} {
    %c0 = arith.constant 0 : index
    %c0_0 = arith.constant 0 : index
    %0 = vector.load %arg1[%c0, %c0_0] : memref<8x128xf32, #tpu.memory_space<vmem>>, vector<8x128xf32>
    %1 = arith.truncf %0 : vector<8x128xf32> to vector<8x128xbf16>
    %c0_1 = arith.constant 0 : index
    %c0_2 = arith.constant 0 : index
    %2 = vector.load %arg2[%c0_1, %c0_2] : memref<128x128xbf16, #tpu.memory_space<vmem>>, vector<128x128xbf16>
    %cst = arith.constant dense<0.000000e+00> : vector<8x128xf32>
    %3 = tpu.matmul %1, %2, %cst {dimension_numbers = #tpu.dot_dimension_numbers<[1], [0], [0], [1], [0, 0, 1, 1], [], []>} : vector<8x128xbf16>, vector<128x128xbf16>, vector<8x128xf32> -> vector<8x128xf32>
    %c0_3 = arith.constant 0 : index
    %c0_4 = arith.constant 0 : index
    %4 = vector.load %arg5[%c0_3, %c0_4] : memref<1x128xf32, #tpu.memory_space<vmem>>, vector<1x128xf32>
    %5 = vector.broadcast %4 : vector<1x128xf32> to vector<8x128xf32>
    %6 = arith.addf %3, %5 : vector<8x128xf32>
    %cst_5 = arith.constant 0.000000e+00 : f32
    %7 = vector.broadcast %cst_5 : f32 to vector<8x128xf32>
    %8 = arith.maximumf %6, %7 : vector<8x128xf32>
    %9 = arith.truncf %8 : vector<8x128xf32> to vector<8x128xbf16>
    %c0_6 = arith.constant 0 : index
    %c0_7 = arith.constant 0 : index
    %10 = vector.load %arg3[%c0_6, %c0_7] : memref<128x128xbf16, #tpu.memory_space<vmem>>, vector<128x128xbf16>
    %cst_8 = arith.constant dense<0.000000e+00> : vector<8x128xf32>
    %11 = tpu.matmul %9, %10, %cst_8 {dimension_numbers = #tpu.dot_dimension_numbers<[1], [0], [0], [1], [0, 0, 1, 1], [], []>} : vector<8x128xbf16>, vector<128x128xbf16>, vector<8x128xf32> -> vector<8x128xf32>
    %c0_9 = arith.constant 0 : index
    %c0_10 = arith.constant 0 : index
    %12 = vector.load %arg6[%c0_9, %c0_10] : memref<1x128xf32, #tpu.memory_space<vmem>>, vector<1x128xf32>
    %13 = vector.broadcast %12 : vector<1x128xf32> to vector<8x128xf32>
    %14 = arith.addf %11, %13 : vector<8x128xf32>
    %cst_11 = arith.constant 0.000000e+00 : f32
    %15 = vector.broadcast %cst_11 : f32 to vector<8x128xf32>
    %16 = arith.maximumf %14, %15 : vector<8x128xf32>
    %17 = arith.truncf %16 : vector<8x128xf32> to vector<8x128xbf16>
    %c0_12 = arith.constant 0 : index
    %c0_13 = arith.constant 0 : index
    %18 = vector.load %arg4[%c0_12, %c0_13] : memref<128x128xbf16, #tpu.memory_space<vmem>>, vector<128x128xbf16>
    %cst_14 = arith.constant dense<0.000000e+00> : vector<8x128xf32>
    %19 = tpu.matmul %17, %18, %cst_14 {dimension_numbers = #tpu.dot_dimension_numbers<[1], [0], [0], [1], [0, 0, 1, 1], [], []>} : vector<8x128xbf16>, vector<128x128xbf16>, vector<8x128xf32> -> vector<8x128xf32>
    %c0_15 = arith.constant 0 : index
    %c0_16 = arith.constant 0 : index
    %20 = vector.load %arg7[%c0_15, %c0_16] : memref<1x128xf32, #tpu.memory_space<vmem>>, vector<1x128xf32>
    %21 = vector.broadcast %20 : vector<1x128xf32> to vector<8x128xf32>
    %22 = arith.addf %19, %21 : vector<8x128xf32>
    %c0_17 = arith.constant 0 : index
    %c0_18 = arith.constant 0 : index
    %23 = vector.load %arg15[%c0_17, %c0_18] : memref<8x128xf32, #tpu.memory_space<vmem>>, vector<8x128xf32>
    tpu.vector_store %arg15[%c0_17, %c0_18], %22 {strides = array<i32>} : memref<8x128xf32, #tpu.memory_space<vmem>>, vector<8x128xf32>,
    %24 = arith.truncf %22 : vector<8x128xf32> to vector<8x128xbf16>
    %c0_19 = arith.constant 0 : index
    %c0_20 = arith.constant 0 : index
    %25 = vector.load %arg10[%c0_19, %c0_20] : memref<128x128xbf16, #tpu.memory_space<vmem>>, vector<128x128xbf16>
    %cst_21 = arith.constant dense<0.000000e+00> : vector<8x128xf32>
    %26 = tpu.matmul %24, %25, %cst_21 {dimension_numbers = #tpu.dot_dimension_numbers<[1], [0], [0], [1], [0, 0, 1, 1], [], []>} : vector<8x128xbf16>, vector<128x128xbf16>, vector<8x128xf32> -> vector<8x128xf32>
    %c0_22 = arith.constant 0 : index
    %c0_23 = arith.constant 0 : index
    %27 = vector.load %arg13[%c0_22, %c0_23] : memref<1x128xf32, #tpu.memory_space<vmem>>, vector<1x128xf32>
    %28 = vector.broadcast %27 : vector<1x128xf32> to vector<8x128xf32>
    %29 = arith.addf %26, %28 : vector<8x128xf32>
    %cst_24 = arith.constant 0.000000e+00 : f32
    %30 = vector.broadcast %cst_24 : f32 to vector<8x128xf32>
    %31 = arith.maximumf %29, %30 : vector<8x128xf32>
    %32 = arith.truncf %31 : vector<8x128xf32> to vector<8x128xbf16>
    %c0_25 = arith.constant 0 : index
    %c0_26 = arith.constant 0 : index
    %33 = vector.load %arg9[%c0_25, %c0_26] : memref<128x128xbf16, #tpu.memory_space<vmem>>, vector<128x128xbf16>
    %cst_27 = arith.constant dense<0.000000e+00> : vector<8x128xf32>
    %34 = tpu.matmul %32, %33, %cst_27 {dimension_numbers = #tpu.dot_dimension_numbers<[1], [0], [0], [1], [0, 0, 1, 1], [], []>} : vector<8x128xbf16>, vector<128x128xbf16>, vector<8x128xf32> -> vector<8x128xf32>
    %c0_28 = arith.constant 0 : index
    %c0_29 = arith.constant 0 : index
    %35 = vector.load %arg12[%c0_28, %c0_29] : memref<1x128xf32, #tpu.memory_space<vmem>>, vector<1x128xf32>
    %36 = vector.broadcast %35 : vector<1x128xf32> to vector<8x128xf32>
    %37 = arith.addf %34, %36 : vector<8x128xf32>
    %cst_30 = arith.constant 0.000000e+00 : f32
    %38 = vector.broadcast %cst_30 : f32 to vector<8x128xf32>
    %39 = arith.maximumf %37, %38 : vector<8x128xf32>
    %40 = arith.truncf %39 : vector<8x128xf32> to vector<8x128xbf16>
    %c0_31 = arith.constant 0 : index
    %c0_32 = arith.constant 0 : index
    %41 = vector.load %arg8[%c0_31, %c0_32] : memref<128x128xbf16, #tpu.memory_space<vmem>>, vector<128x128xbf16>
    %cst_33 = arith.constant dense<0.000000e+00> : vector<8x128xf32>
    %42 = tpu.matmul %40, %41, %cst_33 {dimension_numbers = #tpu.dot_dimension_numbers<[1], [0], [0], [1], [0, 0, 1, 1], [], []>} : vector<8x128xbf16>, vector<128x128xbf16>, vector<8x128xf32> -> vector<8x128xf32>
    %c0_34 = arith.constant 0 : index
    %c0_35 = arith.constant 0 : index
    %43 = vector.load %arg11[%c0_34, %c0_35] : memref<1x128xf32, #tpu.memory_space<vmem>>, vector<1x128xf32>
    %44 = vector.broadcast %43 : vector<1x128xf32> to vector<8x128xf32>
    %45 = arith.addf %42, %44 : vector<8x128xf32>
    %c0_36 = arith.constant 0 : index
    %c0_37 = arith.constant 0 : index
    %46 = vector.load %arg14[%c0_36, %c0_37] : memref<8x128xf32, #tpu.memory_space<vmem>>, vector<8x128xf32>
    tpu.vector_store %arg14[%c0_36, %c0_37], %45 {strides = array<i32>} : memref<8x128xf32, #tpu.memory_space<vmem>>, vector<8x128xf32>,
    return
  }
  func.func @transform_0(%arg0: i32) -> (i32, i32) {
    %c0_i32 = arith.constant 0 : i32
    %c0_i32_0 = arith.constant 0 : i32
    return %arg0, %c0_i32 : i32, i32
  }
  func.func @transform_1(%arg0: i32) -> (i32, i32) {
    %c0_i32 = arith.constant 0 : i32
    %c0_i32_0 = arith.constant 0 : i32
    %c0_i32_1 = arith.constant 0 : i32
    return %c0_i32, %c0_i32_0 : i32, i32
  }
  func.func @transform_2(%arg0: i32) -> (i32, i32) {
    %c0_i32 = arith.constant 0 : i32
    %c0_i32_0 = arith.constant 0 : i32
    %c0_i32_1 = arith.constant 0 : i32
    return %c0_i32, %c0_i32_0 : i32, i32
  }
  func.func @transform_3(%arg0: i32) -> (i32, i32) {
    %c0_i32 = arith.constant 0 : i32
    %c0_i32_0 = arith.constant 0 : i32
    %c0_i32_1 = arith.constant 0 : i32
    return %c0_i32, %c0_i32_0 : i32, i32
  }
  func.func @transform_4(%arg0: i32) -> (i32, i32) {
    %c0_i32 = arith.constant 0 : i32
    %c0_i32_0 = arith.constant 0 : i32
    %c0_i32_1 = arith.constant 0 : i32
    return %c0_i32, %c0_i32_0 : i32, i32
  }
  func.func @transform_5(%arg0: i32) -> (i32, i32) {
    %c0_i32 = arith.constant 0 : i32
    %c0_i32_0 = arith.constant 0 : i32
    %c0_i32_1 = arith.constant 0 : i32
    return %c0_i32, %c0_i32_0 : i32, i32
  }
  func.func @transform_6(%arg0: i32) -> (i32, i32) {
    %c0_i32 = arith.constant 0 : i32
    %c0_i32_0 = arith.constant 0 : i32
    %c0_i32_1 = arith.constant 0 : i32
    return %c0_i32, %c0_i32_0 : i32, i32
  }
  func.func @transform_7(%arg0: i32) -> (i32, i32) {
    %c0_i32 = arith.constant 0 : i32
    %c0_i32_0 = arith.constant 0 : i32
    %c0_i32_1 = arith.constant 0 : i32
    return %c0_i32, %c0_i32_0 : i32, i32
  }
  func.func @transform_8(%arg0: i32) -> (i32, i32) {
    %c0_i32 = arith.constant 0 : i32
    %c0_i32_0 = arith.constant 0 : i32
    %c0_i32_1 = arith.constant 0 : i32
    return %c0_i32, %c0_i32_0 : i32, i32
  }
  func.func @transform_9(%arg0: i32) -> (i32, i32) {
    %c0_i32 = arith.constant 0 : i32
    %c0_i32_0 = arith.constant 0 : i32
    %c0_i32_1 = arith.constant 0 : i32
    return %c0_i32, %c0_i32_0 : i32, i32
  }
  func.func @transform_10(%arg0: i32) -> (i32, i32) {
    %c0_i32 = arith.constant 0 : i32
    %c0_i32_0 = arith.constant 0 : i32
    %c0_i32_1 = arith.constant 0 : i32
    return %c0_i32, %c0_i32_0 : i32, i32
  }
  func.func @transform_11(%arg0: i32) -> (i32, i32) {
    %c0_i32 = arith.constant 0 : i32
    %c0_i32_0 = arith.constant 0 : i32
    %c0_i32_1 = arith.constant 0 : i32
    return %c0_i32, %c0_i32_0 : i32, i32
  }
  func.func @transform_12(%arg0: i32) -> (i32, i32) {
    %c0_i32 = arith.constant 0 : i32
    %c0_i32_0 = arith.constant 0 : i32
    %c0_i32_1 = arith.constant 0 : i32
    return %c0_i32, %c0_i32_0 : i32, i32
  }
  func.func @transform_13(%arg0: i32) -> (i32, i32) {
    %c0_i32 = arith.constant 0 : i32
    %c0_i32_0 = arith.constant 0 : i32
    return %arg0, %c0_i32 : i32, i32
  }
  func.func @transform_14(%arg0: i32) -> (i32, i32) {
    %c0_i32 = arith.constant 0 : i32
    %c0_i32_0 = arith.constant 0 : i32
    return %arg0, %c0_i32 : i32, i32
  }
}

</mosaic_0001>

<bundles_post_ra>
// kernel: dec_ae_forward_prepared.1
= control target key start
LH: loop header
LB: loop body
LE: loop exit
PB: predicated region body
PF: predicated region fallthrough
CT: control target
= control target key end

     0   :  { %20 = vsyncpa [#allocation3], 0  ;;  %s1512_s0 = inlined_call_operand.vmem [shape: f32[8,128], index: 0, kind: input, shape index: {}]   ;;  %s1513_s1 = inlined_call_operand.hbm [shape: bf16[128,128], index: 1, kind: input, shape index: {}]   ;;  %s1514_s2 = inlined_call_operand.hbm [shape: bf16[128,128], index: 2, kind: input, shape index: {}]   ;;  %s1515_s3 = inlined_call_operand.hbm [shape: bf16[128,128], index: 3, kind: input, shape index: {}]   ;;  %s1516_s4 = inlined_call_operand.vmem [shape: f32[1,128], index: 4, kind: input, shape index: {}]   ;;  %s1517_s5 = inlined_call_operand.vmem [shape: f32[1,128], index: 5, kind: input, shape index: {}]   ;;  %s1518_s6 = inlined_call_operand.vmem [shape: f32[1,128], index: 6, kind: input, shape index: {}]   ;;  %s1519_s7 = inlined_call_operand.hbm [shape: bf16[128,128], index: 7, kind: input, shape index: {}]   ;;  %s1520_s8 = inlined_call_operand.hbm [shape: bf16[128,128], index: 8, kind: input, shape index: {}]   ;;  %s1521_s9 = inlined_call_operand.hbm [shape: bf16[128,128], index: 9, kind: input, shape index: {}]   ;;  %s1522_s10 = inlined_call_operand.vmem [shape: f32[1,128], index: 10, kind: input, shape index: {}]   ;;  %s1523_s11 = inlined_call_operand.vmem [shape: f32[1,128], index: 11, kind: input, shape index: {}]   ;;  %s1524_s12 = inlined_call_operand.vmem [shape: f32[1,128], index: 12, kind: input, shape index: {}]   ;;  %s1525_s13 = inlined_call_operand.hbm [shape: f32[8,128], index: 13, kind: output, shape index: {0}]   ;;  %s1526_s14 = inlined_call_operand.hbm [shape: f32[8,128], index: 14, kind: output, shape index: {1}]  }
   0x1   :  { %21 = vsyncpa [#allocation6], 0 }
   0x2   :  { %22 = vsyncpa [#allocation9], 0 }
   0x3   :  { %23 = vsyncpa [#allocation12], 0 }
   0x4   :  { %24 = vsyncpa [#allocation4], 0 }
   0x5   :  { %25 = vsyncpa [#allocation15], 0  ;;  %s1302_s29 = smov [#allocation5]   ;;  %s1303_s15 = smov [#allocation8]  }
   0x6   :  { %s45_s30 = sshll.u32 %s1302_s29, 4  ;;  %s75_s16 = sshll.u32 %s1303_s15, 4  ;;  %s46_s30 = int_to_ptr.vmem [resolvable:$true] %s45_s30  ;;  %s76_s16 = int_to_ptr.vmem [resolvable:$true] %s75_s16 }
   0x7   :  { %s1138_s17 = scalar_lea.vmem %s46_s30, 1024  ;;  %p1143_p1 = scmp.lt.s32.totalorder %s46_s30, %s46_s30 }
   0x8   :  { %p1139_p0 = scmp.ne.s32.totalorder %s46_s30, %s1138_s17  ;;  %p1144_p2 = scmp.lt.s32.totalorder %s1138_s17, %s1138_s17 }
   0xa   :  { %p1145_p3 = por %p1144_p2, %p1143_p1 }
   0xc   :  { %p1146_p4 = pnand %p1145_p3, %p1139_p0 }
   0xe   :  { %1149 = shalt.err (!%p1146_p4)
}
   0xf   :  { %s1304_s18 = smov 64   ;;  %s1305_s19 = smov 4  }
  0x10   :  { %51 = dma.hbm_to_vmem [thread:$0]  %s1514_s2, 1024, %s46_s30, [#allocation6], %s1304_s18, %s1304_s18, %s1305_s19  }
  0x11   :  { %s1158_s22 = scalar_lea.vmem %s76_s16, 1024  ;;  %p1163_p6 = scmp.lt.s32.totalorder %s76_s16, %s76_s16 }
  0x12   :  { %p1159_p5 = scmp.ne.s32.totalorder %s76_s16, %s1158_s22  ;;  %p1164_p7 = scmp.lt.s32.totalorder %s1158_s22, %s1158_s22 }
  0x14   :  { %p1165_p8 = por %p1164_p7, %p1163_p6 }
  0x16   :  { %p1166_p9 = pnand %p1165_p8, %p1159_p5 }
  0x18   :  { %1169 = shalt.err (!%p1166_p9)
}
  0x19   :  { %81 = dma.hbm_to_vmem [thread:$0]  %s1519_s7, 1024, %s76_s16, [#allocation9], %s1304_s18, %s1304_s18, %s1305_s19  }
  0x1a   :  { %s1306_s25 = smov [#allocation2]   ;;  %s1307_s27 = smov [#allocation7]  }
  0x1b   :  { %s33_s26 = sshll.u32 %s1306_s25, 4  ;;  %s57_s28 = sshll.u32 %s1307_s27, 4  ;;  %s34_s26 = int_to_ptr.vmem [resolvable:$true] %s33_s26  ;;  %s58_s28 = int_to_ptr.vmem [resolvable:$true] %s57_s28 }
  0x1c   :  { %s1178_s2 = scalar_lea.vmem %s34_s26, 1024  ;;  %p1183_p11 = scmp.lt.s32.totalorder %s34_s26, %s34_s26 }
  0x1d   :  { %p1179_p10 = scmp.ne.s32.totalorder %s34_s26, %s1178_s2  ;;  %p1184_p12 = scmp.lt.s32.totalorder %s1178_s2, %s1178_s2 }
  0x1f   :  { %p1185_p13 = por %p1184_p12, %p1183_p11 }
  0x21   :  { %p1186_p0 = pnand %p1185_p13, %p1179_p10 }
  0x23   :  { %1189 = shalt.err (!%p1186_p0)
}
  0x24   :  { %39 = dma.hbm_to_vmem [thread:$0]  %s1513_s1, 1024, %s34_s26, [#allocation3], %s1304_s18, %s1304_s18, %s1305_s19  }
  0x25   :  { %s1198_s7 = scalar_lea.vmem %s58_s28, 1024  ;;  %p1203_p2 = scmp.lt.s32.totalorder %s58_s28, %s58_s28 }
  0x26   :  { %p1199_p1 = scmp.ne.s32.totalorder %s58_s28, %s1198_s7  ;;  %p1204_p3 = scmp.lt.s32.totalorder %s1198_s7, %s1198_s7 }
  0x28   :  { %p1205_p4 = por %p1204_p3, %p1203_p2 }
  0x2a   :  { %p1206_p5 = pnand %p1205_p4, %p1199_p1 }
  0x2c   :  { %1209 = shalt.err (!%p1206_p5)
}
  0x2d   :  { %63 = dma.hbm_to_vmem [thread:$0]  %s1515_s3, 1024, %s58_s28, [#allocation6], %s1304_s18, %s1304_s18, %s1305_s19  }
  0x2e   :  { %s1308_s17 = smov [#allocation10]   ;;  %s1309_s21 = smov [#allocation11]  }
  0x2f   :  { %s87_s20 = sshll.u32 %s1308_s17, 4  ;;  %s99_s22 = sshll.u32 %s1309_s21, 4  ;;  %s88_s20 = int_to_ptr.vmem [resolvable:$true] %s87_s20  ;;  %s100_s22 = int_to_ptr.vmem [resolvable:$true] %s99_s22 }
  0x30   :  { %s1218_s1 = scalar_lea.vmem %s88_s20, 1024  ;;  %p1223_p7 = scmp.lt.s32.totalorder %s88_s20, %s88_s20 }
  0x31   :  { %p1219_p6 = scmp.ne.s32.totalorder %s88_s20, %s1218_s1  ;;  %p1224_p8 = scmp.lt.s32.totalorder %s1218_s1, %s1218_s1 }
  0x33   :  { %p1225_p9 = por %p1224_p8, %p1223_p7 }
  0x35   :  { %p1226_p10 = pnand %p1225_p9, %p1219_p6 }
  0x37   :  { %1229 = shalt.err (!%p1226_p10)
}
  0x38   :  { %93 = dma.hbm_to_vmem [thread:$0]  %s1520_s8, 1024, %s88_s20, [#allocation9], %s1304_s18, %s1304_s18, %s1305_s19  }
  0x39   :  { %s1238_s3 = scalar_lea.vmem %s100_s22, 1024  ;;  %p1243_p12 = scmp.lt.s32.totalorder %s100_s22, %s100_s22 }
  0x3a   :  { %p1239_p11 = scmp.ne.s32.totalorder %s100_s22, %s1238_s3  ;;  %p1244_p13 = scmp.lt.s32.totalorder %s1238_s3, %s1238_s3 }
  0x3c   :  { %p1245_p0 = por %p1244_p13, %p1243_p12 }
  0x3e   :  { %p1246_p1 = pnand %p1245_p0, %p1239_p11 }
  0x40   :  { %1249 = shalt.err (!%p1246_p1)
}
  0x41   :  { %105 = dma.hbm_to_vmem [thread:$0]  %s1521_s9, 1024, %s100_s22, [#allocation12], %s1304_s18, %s1304_s18, %s1305_s19  }
  0x42   :  { %1290 = dma.done.wait [#allocation3], 1024  }
  0x43   :  { %1291 = vsyncadd [#allocation3], 4294966272 }
  0x44   :  { %1292 = dma.done.wait [#allocation6], 2048  }
  0x45   :  { %1293 = vsyncadd [#allocation6], 4294965248 }
  0x46   :  { %1294 = dma.done.wait [#allocation9], 2048  }
  0x47   :  { %1295 = vsyncadd [#allocation9], 4294965248 }
  0x48   :  { %1296 = dma.done.wait [#allocation12], 1024  }
  0x49   :  { %1297 = vsyncadd [#allocation12], 4294966272  ;;  %v1310_v0 = vmov 0.0   ;;  %vm1311_vm0 = vmmov 0   ;;  %v1082_v1 = vld [vmem:[#allocation2 + $0x38] sm:$0xff]   ;;  %v1083_v2 = vld [vmem:[#allocation2 + $0x30] sm:$0xff]  }
  0x4a   :  { %950 = vmatprep.subr.bf16.mxu0 %v1310_v0  ;;  %966 = vmatprep.mubr.msk.bf16.mxu0 %vm1311_vm0, %v1310_v0  ;;  %v1084_v3 = vld [vmem:[#allocation2 + $0x28] sm:$0xff]   ;;  %v1090_v4 = vld [vmem:[#allocation5 + $0x38] sm:$0xff]   ;;  %v1085_v5 = vld [vmem:[#allocation2 + $0x20] sm:$0xff]  }
  0x4b   :  { %970 = vmatprep.subr.bf16.mxu1 %v1310_v0  ;;  %986 = vmatprep.mubr.msk.bf16.mxu1 %vm1311_vm0, %v1310_v0  ;;  %v1091_v6 = vld [vmem:[#allocation5 + $0x30] sm:$0xff]   ;;  %v1086_v7 = vld [vmem:[#allocation2 + $0x18] sm:$0xff]   ;;  %v1092_v8 = vld [vmem:[#allocation5 + $0x28] sm:$0xff]  }
  0x4c   :  { %951 = vmatpush3.bf16.msra.mxu0 %v1082_v1  ;;  %971 = vmatpush3.bf16.msra.mxu1 %v1090_v4  ;;  %v1087_v9 = vld [vmem:[#allocation2 + $0x10] sm:$0xff]   ;;  %v1093_v10 = vld [vmem:[#allocation5 + $0x20] sm:$0xff]   ;;  %v1088_v11 = vld [vmem:[#allocation2 + $0x8] sm:$0xff]  }
  0x4d   :  { %952 = vmatprep.subr.bf16.mxu0 %v1310_v0  ;;  %972 = vmatprep.subr.bf16.mxu1 %v1310_v0  ;;  %v1094_v12 = vld [vmem:[#allocation5 + $0x18] sm:$0xff]   ;;  %v1089_v13 = vld [vmem:[#allocation2] sm:$0xff]   ;;  %v1095_v15 = vld [vmem:[#allocation5 + $0x10] sm:$0xff]  }
  0x4e   :  { %v131_v14 = vld [vmem:[%s1512_s0] sm:$0xff]  ;;  %v1096_v17 = vld [vmem:[#allocation5 + $0x8] sm:$0xff]   ;;  %v1098_v19 = vld [vmem:[#allocation7 + $0x38] sm:$0xff]  }
  0x4f   :  { %v132_v16 = vpack.c.bf16 %v131_v14, %v131_v14  ;;  %v1097_v18 = vld [vmem:[#allocation5] sm:$0xff]   ;;  %v1099_v20 = vld [vmem:[#allocation7 + $0x30] sm:$0xff]   ;;  %v1100_v21 = vld [vmem:[#allocation7 + $0x28] sm:$0xff]  }
  0x50   :  { %953 = vmatpush3.bf16.msra.mxu0 %v1083_v2  ;;  %973 = vmatpush3.bf16.msra.mxu1 %v1091_v6  ;;  %v1101_v22 = vld [vmem:[#allocation7 + $0x20] sm:$0xff]   ;;  %v1102_v23 = vld [vmem:[#allocation7 + $0x18] sm:$0xff]   ;;  %v1103_v24 = vld [vmem:[#allocation7 + $0x10] sm:$0xff]  }
  0x51   :  { %954 = vmatprep.subr.bf16.mxu0 %v1310_v0  ;;  %974 = vmatprep.subr.bf16.mxu1 %v1310_v0  ;;  %v842_v25 = vld [vmem:[%s1516_s4] ss:$0 sm:$0xff]  ;;  %v1104_v33 = vld [vmem:[#allocation7 + $0x8] sm:$0xff]   ;;  %v1106_v35 = vld [vmem:[#allocation11 + $0x38] sm:$0xff]  }
  0x52   :  { %v1105_v34 = vld [vmem:[#allocation7] sm:$0xff]   ;;  %v1107_v36 = vld [vmem:[#allocation11 + $0x30] sm:$0xff]   ;;  %v1108_v37 = vld [vmem:[#allocation11 + $0x28] sm:$0xff]  }
  0x53   :  { %v1109_v38 = vld [vmem:[#allocation11 + $0x20] sm:$0xff]   ;;  %v1110_v39 = vld [vmem:[#allocation11 + $0x18] sm:$0xff]   ;;  %v1111_v40 = vld [vmem:[#allocation11 + $0x10] sm:$0xff]  }
  0x54   :  { %955 = vmatpush3.bf16.msra.mxu0 %v1084_v3  ;;  %975 = vmatpush3.bf16.msra.mxu1 %v1092_v8  ;;  %v1112_v41 = vld [vmem:[#allocation11 + $0x8] sm:$0xff]   ;;  %v851_v42 = vld [vmem:[%s1517_s5] ss:$0 sm:$0xff]  ;;  %v1114_v51 = vld [vmem:[#allocation10 + $0x38] sm:$0xff]  }
  0x55   :  { %956 = vmatprep.subr.bf16.mxu0 %v1310_v0  ;;  %976 = vmatprep.subr.bf16.mxu1 %v1310_v0  ;;  %v1113_v50 = vld [vmem:[#allocation11] sm:$0xff]   ;;  %v1115_v52 = vld [vmem:[#allocation10 + $0x30] sm:$0xff]   ;;  %v1116_v53 = vld [vmem:[#allocation10 + $0x28] sm:$0xff]  }
  0x56   :  { %v1117_v54 = vld [vmem:[#allocation10 + $0x20] sm:$0xff]   ;;  %v1118_v55 = vld [vmem:[#allocation10 + $0x18] sm:$0xff]   ;;  %v1119_v56 = vld [vmem:[#allocation10 + $0x10] sm:$0xff]  }
  0x57   :  { %v860_v57 = vld [vmem:[%s1518_s6] ss:$0 sm:$0xff]  ;;  %v1120_v1 = vld [vmem:[#allocation10 + $0x8] sm:$0xff]   ;;  %v1122_v3 = vld [vmem:[#allocation8 + $0x38] sm:$0xff]  }
  0x58   :  { %957 = vmatpush3.bf16.msra.mxu0 %v1085_v5  ;;  %977 = vmatpush3.bf16.msra.mxu1 %v1093_v10  ;;  %v1121_v2 = vld [vmem:[#allocation10] sm:$0xff]   ;;  %v1123_v4 = vld [vmem:[#allocation8 + $0x30] sm:$0xff]   ;;  %v1124_v5 = vld [vmem:[#allocation8 + $0x28] sm:$0xff]  }
  0x59   :  { %958 = vmatprep.subr.bf16.mxu0 %v1310_v0  ;;  %978 = vmatprep.subr.bf16.mxu1 %v1310_v0  ;;  %v1125_v6 = vld [vmem:[#allocation8 + $0x20] sm:$0xff]   ;;  %v1127_v8 = vld [vmem:[#allocation8 + $0x10] sm:$0xff]  }
  0x5c   :  { %959 = vmatpush3.bf16.msra.mxu0 %v1086_v7  ;;  %979 = vmatpush3.bf16.msra.mxu1 %v1094_v12  ;;  %v1126_v7 = vld [vmem:[#allocation8 + $0x18] sm:$0xff]  }
  0x5d   :  { %960 = vmatprep.subr.bf16.mxu0 %v1310_v0  ;;  %980 = vmatprep.subr.bf16.mxu1 %v1310_v0 }
  0x60   :  { %961 = vmatpush3.bf16.msra.mxu0 %v1087_v9  ;;  %981 = vmatpush3.bf16.msra.mxu1 %v1095_v15  ;;  %v869_v9 = vld [vmem:[%s1524_s12] ss:$0 sm:$0xff]  ;;  %s1312_s12 = smov [#allocation14]  }
  0x61   :  { %962 = vmatprep.subr.bf16.mxu0 %v1310_v0  ;;  %982 = vmatprep.subr.bf16.mxu1 %v1310_v0  ;;  %s826_s30 = sshll.u32 %s1312_s12, 4  ;;  %s827_s30 = int_to_ptr.vmem [resolvable:$true] %s826_s30 }
  0x62   :  { %s1250_s7 = scalar_lea.vmem %s827_s30, 128  ;;  %p1255_p3 = scmp.lt.s32.totalorder %s827_s30, %s827_s30 }
  0x63   :  { %p1251_p2 = scmp.ne.s32.totalorder %s827_s30, %s1250_s7  ;;  %p1256_p4 = scmp.lt.s32.totalorder %s1250_s7, %s1250_s7 }
  0x64   :  { %963 = vmatpush3.bf16.msra.mxu0 %v1088_v11  ;;  %983 = vmatpush3.bf16.msra.mxu1 %v1096_v17  ;;  %v1128_v17 = vld [vmem:[#allocation8 + $0x8] sm:$0xff]  }
  0x65   :  { %964 = vmatprep.subr.bf16.mxu0 %v1310_v0  ;;  %984 = vmatprep.subr.bf16.mxu1 %v1310_v0  ;;  %p1257_p5 = por %p1256_p4, %p1255_p3 }
  0x67   :  { %p1258_p6 = pnand %p1257_p5, %p1251_p2 }
  0x68   :  { %965 = vmatpush3.bf16.msra.mxu0 %v1089_v13  ;;  %985 = vmatpush3.bf16.msra.mxu1 %v1097_v18  ;;  %v1129_v18 = vld [vmem:[#allocation8] sm:$0xff]  }
  0x69   :  { %990 = vmatprep.subr.bf16.mxu0 %v1310_v0  ;;  %1010 = vmatprep.subr.bf16.mxu1 %v1310_v0 }
  0x6b   :  { %967 = vmatmul.mubr.bf16.vlgmr.msra.gmra.mxu0 %v132_v16 }
  0x6c   :  { %1006 = vmatprep.mubr.msk.bf16.mxu0 %vm1311_vm0, %v1310_v0  ;;  %991 = vmatpush3.bf16.msra.mxu0 %v1098_v19  ;;  %v878_v19 = vld [vmem:[%s1523_s11] ss:$0 sm:$0xff] }
  0x6d   :  { %992 = vmatprep.subr.bf16.mxu0 %v1310_v0 }
  0x70   :  { %993 = vmatpush3.bf16.msra.mxu0 %v1099_v20 }
  0x71   :  { %994 = vmatprep.subr.bf16.mxu0 %v1310_v0 }
  0x74   :  { %995 = vmatpush3.bf16.msra.mxu0 %v1100_v21 }
  0x75   :  { %996 = vmatprep.subr.bf16.mxu0 %v1310_v0 }
  0x78   :  { %997 = vmatpush3.bf16.msra.mxu0 %v1101_v22 }
  0x79   :  { %998 = vmatprep.subr.bf16.mxu0 %v1310_v0 }
  0x7c   :  { %999 = vmatpush3.bf16.msra.mxu0 %v1102_v23 }
  0x7d   :  { %1000 = vmatprep.subr.bf16.mxu0 %v1310_v0 }
  0x80   :  { %1001 = vmatpush3.bf16.msra.mxu0 %v1103_v24 }
  0x81   :  { %1002 = vmatprep.subr.bf16.mxu0 %v1310_v0 }
  0x84   :  { %1003 = vmatpush3.bf16.msra.mxu0 %v1104_v33 }
  0x85   :  { %1004 = vmatprep.subr.bf16.mxu0 %v1310_v0 }
  0x88   :  { %1005 = vmatpush3.bf16.msra.mxu0 %v1105_v34 }
  0x89   :  { %1030 = vmatprep.subr.bf16.mxu0 %v1310_v0 }
 0x12b   :  { %v238_v26 = vpop.f32.mrf.mxu0 }
 0x12c   :  { %v239_v27 = vadd.f32 %v842_v25, %v238_v26 }
 0x12d   :  { %v968_v28 = vpop.f32.mrf.mxu0 }
 0x12e   :  { %v244_v29 = vmax.f32 %v239_v27, 0.0 }
 0x12f   :  { %v241_v30 = vpop.f32.mrf.mxu0 }
 0x130   :  { %v245_v31 = vpack.c.bf16 %v244_v29, %v244_v29 }
 0x131   :  { %v969_v32 = vpop.f32.mrf.mxu0 }
 0x132   :  { %987 = vmatmul.mubr.bf16.vlgmr.msra.gmra.mxu1 %v245_v31 }
 0x133   :  { %1026 = vmatprep.mubr.msk.bf16.mxu1 %vm1311_vm0, %v1310_v0  ;;  %1011 = vmatpush3.bf16.msra.mxu1 %v1106_v35 }
 0x134   :  { %1012 = vmatprep.subr.bf16.mxu1 %v1310_v0 }
 0x137   :  { %1013 = vmatpush3.bf16.msra.mxu1 %v1107_v36 }
 0x138   :  { %1014 = vmatprep.subr.bf16.mxu1 %v1310_v0 }
 0x13b   :  { %1015 = vmatpush3.bf16.msra.mxu1 %v1108_v37 }
 0x13c   :  { %1016 = vmatprep.subr.bf16.mxu1 %v1310_v0 }
 0x13f   :  { %1017 = vmatpush3.bf16.msra.mxu1 %v1109_v38 }
 0x140   :  { %1018 = vmatprep.subr.bf16.mxu1 %v1310_v0 }
 0x143   :  { %1019 = vmatpush3.bf16.msra.mxu1 %v1110_v39 }
 0x144   :  { %1020 = vmatprep.subr.bf16.mxu1 %v1310_v0 }
 0x147   :  { %1021 = vmatpush3.bf16.msra.mxu1 %v1111_v40 }
 0x148   :  { %1022 = vmatprep.subr.bf16.mxu1 %v1310_v0 }
 0x14b   :  { %1023 = vmatpush3.bf16.msra.mxu1 %v1112_v41 }
 0x14c   :  { %1024 = vmatprep.subr.bf16.mxu1 %v1310_v0 }
 0x14f   :  { %1025 = vmatpush3.bf16.msra.mxu1 %v1113_v50 }
 0x150   :  { %1050 = vmatprep.subr.bf16.mxu1 %v1310_v0 }
 0x1f2   :  { %v351_v43 = vpop.f32.mrf.mxu1 }
 0x1f3   :  { %v352_v44 = vadd.f32 %v851_v42, %v351_v43 }
 0x1f4   :  { %v988_v45 = vpop.f32.mrf.mxu1 }
 0x1f5   :  { %v357_v46 = vmax.f32 %v352_v44, 0.0 }
 0x1f6   :  { %v354_v47 = vpop.f32.mrf.mxu1 }
 0x1f7   :  { %v358_v48 = vpack.c.bf16 %v357_v46, %v357_v46 }
 0x1f8   :  { %v989_v49 = vpop.f32.mrf.mxu1 }
 0x1f9   :  { %1007 = vmatmul.mubr.bf16.vlgmr.msra.gmra.mxu0 %v358_v48 }
 0x1fa   :  { %1046 = vmatprep.mubr.msk.bf16.mxu0 %vm1311_vm0, %v1310_v0  ;;  %1031 = vmatpush3.bf16.msra.mxu0 %v1114_v51 }
 0x1fb   :  { %1032 = vmatprep.subr.bf16.mxu0 %v1310_v0 }
 0x1fe   :  { %1033 = vmatpush3.bf16.msra.mxu0 %v1115_v52 }
 0x1ff   :  { %1034 = vmatprep.subr.bf16.mxu0 %v1310_v0 }
 0x202   :  { %1035 = vmatpush3.bf16.msra.mxu0 %v1116_v53 }
 0x203   :  { %1036 = vmatprep.subr.bf16.mxu0 %v1310_v0 }
 0x206   :  { %1037 = vmatpush3.bf16.msra.mxu0 %v1117_v54 }
 0x207   :  { %1038 = vmatprep.subr.bf16.mxu0 %v1310_v0 }
 0x20a   :  { %1039 = vmatpush3.bf16.msra.mxu0 %v1118_v55 }
 0x20b   :  { %1040 = vmatprep.subr.bf16.mxu0 %v1310_v0 }
 0x20e   :  { %1041 = vmatpush3.bf16.msra.mxu0 %v1119_v56 }
 0x20f   :  { %1042 = vmatprep.subr.bf16.mxu0 %v1310_v0 }
 0x212   :  { %1043 = vmatpush3.bf16.msra.mxu0 %v1120_v1 }
 0x213   :  { %1044 = vmatprep.subr.bf16.mxu0 %v1310_v0 }
 0x216   :  { %1045 = vmatpush3.bf16.msra.mxu0 %v1121_v2 }
 0x2b9   :  { %v464_v58 = vpop.f32.mrf.mxu0 }
 0x2ba   :  { %v465_v59 = vadd.f32 %v860_v57, %v464_v58 }
 0x2bb   :  { %v1008_v60 = vpop.f32.mrf.mxu0 }
 0x2bc   :  { %v471_v61 = vpack.c.bf16 %v465_v59, %v465_v59  ;;  %470 = vst [vmem:[#allocation14] sm:$0xff] %v465_v59 }
 0x2bd   :  { %v467_v62 = vpop.f32.mrf.mxu0 }
 0x2be   :  { %1027 = vmatmul.mubr.bf16.vlgmr.msra.gmra.mxu1 %v471_v61 }
 0x2bf   :  { %v1009_v63 = vpop.f32.mrf.mxu0  ;;  %1066 = vmatprep.mubr.msk.bf16.mxu1 %vm1311_vm0, %v1310_v0  ;;  %1051 = vmatpush3.bf16.msra.mxu1 %v1122_v3 }
 0x2c0   :  { %1052 = vmatprep.subr.bf16.mxu1 %v1310_v0 }
 0x2c3   :  { %1053 = vmatpush3.bf16.msra.mxu1 %v1123_v4 }
 0x2c4   :  { %1054 = vmatprep.subr.bf16.mxu1 %v1310_v0 }
 0x2c7   :  { %1055 = vmatpush3.bf16.msra.mxu1 %v1124_v5 }
 0x2c8   :  { %1056 = vmatprep.subr.bf16.mxu1 %v1310_v0 }
 0x2cb   :  { %1057 = vmatpush3.bf16.msra.mxu1 %v1125_v6 }
 0x2cc   :  { %1058 = vmatprep.subr.bf16.mxu1 %v1310_v0 }
 0x2cf   :  { %1059 = vmatpush3.bf16.msra.mxu1 %v1126_v7 }
 0x2d0   :  { %1060 = vmatprep.subr.bf16.mxu1 %v1310_v0 }
 0x2d3   :  { %1061 = vmatpush3.bf16.msra.mxu1 %v1127_v8 }
 0x2d4   :  { %1062 = vmatprep.subr.bf16.mxu1 %v1310_v0 }
 0x2d7   :  { %1063 = vmatpush3.bf16.msra.mxu1 %v1128_v17 }
 0x2d8   :  { %1064 = vmatprep.subr.bf16.mxu1 %v1310_v0 }
 0x2db   :  { %1065 = vmatpush3.bf16.msra.mxu1 %v1129_v18 }
 0x37e   :  { %v577_v10 = vpop.f32.mrf.mxu1 }
 0x37f   :  { %v578_v11 = vadd.f32 %v869_v9, %v577_v10 }
 0x380   :  { %v1028_v12 = vpop.f32.mrf.mxu1 }
 0x381   :  { %v583_v13 = vmax.f32 %v578_v11, 0.0 }
 0x382   :  { %v580_v14 = vpop.f32.mrf.mxu1 }
 0x383   :  { %v584_v15 = vpack.c.bf16 %v583_v13, %v583_v13 }
 0x384   :  { %v1029_v16 = vpop.f32.mrf.mxu1 }
 0x385   :  { %1047 = vmatmul.mubr.bf16.vlgmr.msra.gmra.mxu0 %v584_v15 }
 0x445   :  { %v690_v20 = vpop.f32.mrf.mxu0 }
 0x446   :  { %v691_v21 = vadd.f32 %v878_v19, %v690_v20 }
 0x447   :  { %v1048_v22 = vpop.f32.mrf.mxu0 }
 0x448   :  { %v696_v23 = vmax.f32 %v691_v21, 0.0 }
 0x449   :  { %v693_v24 = vpop.f32.mrf.mxu0 }
 0x44a   :  { %v697_v25 = vpack.c.bf16 %v696_v23, %v696_v23 }
 0x44b   :  { %v1049_v26 = vpop.f32.mrf.mxu0 }
 0x44c   :  { %1067 = vmatmul.mubr.bf16.vlgmr.msra.gmra.mxu1 %v697_v25 }
 0x44d   :  { %1261 = shalt.err (!%p1258_p6)
}
 0x44e   :  { %829 = dma.vmem_to_hbm [thread:$0]  %s827_s30, 128, %s1526_s14, [#allocation15]   ;;  %v887_v0 = vld [vmem:[%s1522_s10] ss:$0 sm:$0xff] }
 0x44f   :  { %s1313_s20 = smov [#allocation13]  }
 0x450   :  { %s816_s21 = sshll.u32 %s1313_s20, 4  ;;  %s817_s21 = int_to_ptr.vmem [resolvable:$true] %s816_s21 }
 0x451   :  { %s1270_s22 = scalar_lea.vmem %s817_s21, 128  ;;  %p1275_p8 = scmp.lt.s32.totalorder %s817_s21, %s817_s21 }
 0x452   :  { %p1271_p7 = scmp.ne.s32.totalorder %s817_s21, %s1270_s22  ;;  %p1276_p9 = scmp.lt.s32.totalorder %s1270_s22, %s1270_s22 }
 0x454   :  { %p1277_p10 = por %p1276_p9, %p1275_p8 }
 0x456   :  { %p1278_p11 = pnand %p1277_p10, %p1271_p7 }
 0x50c   :  { %v803_v27 = vpop.f32.mrf.mxu1 }
 0x50d   :  { %v804_v28 = vadd.f32 %v887_v0, %v803_v27 }
 0x50e   :  { %v1068_v29 = vpop.f32.mrf.mxu1 }
 0x50f   :  { %809 = vst [vmem:[#allocation13] sm:$0xff] %v804_v28 }
 0x510   :  { %v806_v30 = vpop.f32.mrf.mxu1 }
 0x511   :  { %1281 = shalt.err (!%p1278_p11)
}
 0x512   :  { %819 = dma.vmem_to_hbm [thread:$0]  %s817_s21, 128, %s1525_s13, [#allocation4]   ;;  %v1069_v31 = vpop.f32.mrf.mxu1 }
 0x513   :  { %1298 = dma.done.wait [#allocation4], 128  }
 0x514   :  { %1299 = vsyncadd [#allocation4], 4294967168 }
 0x515   :  { %1300 = dma.done.wait [#allocation15], 128  }
 0x516   :  { %1301 = vsyncadd [#allocation15], 4294967168 }
 0x517   :  { %836 = vsyncpa [#allocation3], 1 }
 0x518   :  { %837 = vsyncpa [#allocation6], 1 }
 0x519   :  { %838 = vsyncpa [#allocation9], 1 }
 0x51a   :  { %839 = vsyncpa [#allocation12], 1 }
 0x51b   :  { %840 = vsyncpa [#allocation4], 1 }
 0x51c   :  { %841 = vsyncpa [#allocation15], 1 }

</bundles_post_ra>
